<compile_context>
chip_gen: v5e
topology: v5e:2x2
jax: 0.10.0
libtpu: 0.0.40
codegen_flags: <defaults>
</compile_context>

<pallas_src>
import functools

import jax
import jax.numpy as jnp
from jax import lax
from jax.experimental import pallas as pl
from jax.experimental.pallas import tpu as pltpu


def _round_up(n, m):
    return ((n + m - 1) // m) * m


def cnn_kernel(x_ref, w1_ref, b1_ref, w2_ref, b2_ref,
               wf1_ref, bf1_ref, wf2_ref, bf2_ref, o_ref):
    """Forward pass for a (TB, L) slab of samples; everything batch-major 2-D.

    x_ref   : (TB, L)             input slab
    w1_ref  : (L, L1*C1)          conv1 as Toeplitz matmul weight
    b1_ref  : (1, L1*C1)
    w2_ref  : (L1*C1, 2*LP*C2)    conv2 Toeplitz weight, cols = [even | odd]
    b2_ref  : (1, 2*LP*C2)
    wf1_ref : (LP*C2, H)          fc1 weight (rows in pooled j*C2+c2 order)
    bf1_ref : (1, H)
    wf2_ref : (H, NCp)            fc2 weight, zero-padded to 128 lanes
    bf2_ref : (1, NCp)
    o_ref   : (TB, NCp)
    """
    x = x_ref[...]                                               # (TB, L)

    # ---- conv1 + relu (single MXU matmul over the whole slab) ----
    h1 = jnp.dot(x, w1_ref[...], preferred_element_type=jnp.float32) + b1_ref[...]
    h1 = jnp.maximum(h1, 0.0)                                    # (TB, L1*C1)

    # ---- conv2 + relu; columns ordered [even positions | odd positions] ----
    h2 = jnp.dot(h1, w2_ref[...], preferred_element_type=jnp.float32) + b2_ref[...]
    h2 = jnp.maximum(h2, 0.0)                                    # (TB, 2*LP*C2)

    # ---- maxpool(2): one element-wise max of the two static halves ----
    half = wf1_ref.shape[0]                                      # LP*C2
    pooled = jnp.maximum(h2[:, :half], h2[:, half:])             # (TB, LP*C2)

    # ---- fc1 + relu (single matmul for the whole slab) ----
    f1 = jnp.dot(pooled, wf1_ref[...], preferred_element_type=jnp.float32) + bf1_ref[...]
    f1 = jnp.maximum(f1, 0.0)                                    # (TB, H)
    # TODO(synk): nn.Dropout(0.5) is identity in eval mode; not applied here.

    # ---- fc2 (lane-dense padded output store) ----
    o_ref[...] = (jnp.dot(f1, wf2_ref[...], preferred_element_type=jnp.float32)
                  + bf2_ref[...])


@functools.partial(jax.jit, static_argnames=("kernel_sizes", "tb"))
def pallas_cnn_forward(x, conv1_w, conv1_b, conv2_w, conv2_b,
                       fc1_w, fc1_b, fc2_w, fc2_b, kernel_sizes, tb=128):
    """x: (B, 1, L) float32 (PyTorch NCL layout). Returns (B, num_classes)."""
    B, _, L = x.shape
    K1, K2 = kernel_sizes
    C1 = conv1_w.shape[0]
    C2 = conv2_w.shape[0]
    H = fc1_w.shape[0]
    NC = fc2_w.shape[0]
    L1 = L - K1 + 1
    L2 = L1 - K2 + 1
    LP = (L2 - 2) // 2 + 1
    assert LP > 0, "pooled length must be positive"

    f32 = jnp.float32

    # Batch tile: multiple of 8 sublanes; clamp to the (padded) batch.
    # 128 fills the v5e/v6e MXU rows; pass tb=256 on v7x if B is large enough.
    TB = min(tb, _round_up(B, 8))
    Bp = _round_up(B, TB)
    NCp = _round_up(NC, 128)                   # lane-dense output slab

    # ---- input: (B, 1, L) -> (Bp, L) batch-major, zero row padding ----
    x2 = x[:, 0, :].astype(f32)
    if Bp != B:
        x2 = jnp.pad(x2, ((0, Bp - B), (0, 0)))

    # ---- conv1 as Toeplitz matmul: W1_big[i, p*C1+c1] = w1[c1, 0, i-p] ----
    w1t = jnp.transpose(conv1_w[:, 0, :], (1, 0)).astype(f32)          # (K1, C1)
    tap1 = jnp.arange(L)[:, None] - jnp.arange(L1)[None, :]            # (L, L1)
    v1 = (tap1 >= 0) & (tap1 < K1)
    W1_big = jnp.where(v1[:, :, None], w1t[jnp.clip(tap1, 0, K1 - 1)], 0.0)
    W1_big = W1_big.reshape(L, L1 * C1)                                # (L, L1*C1)
    b1_big = jnp.tile(conv1_b.astype(f32), L1).reshape(1, L1 * C1)

    # ---- conv2 as Toeplitz matmul, output columns = [even | odd] positions ----
    w2t = jnp.transpose(conv2_w, (2, 1, 0)).astype(f32)                # (K2, C1, C2)
    tap2 = jnp.arange(L1)[:, None] - jnp.arange(L2)[None, :]           # (L1, L2)
    v2 = (tap2 >= 0) & (tap2 < K2)
    W2_full = jnp.where(v2[:, :, None, None],
                        w2t[jnp.clip(tap2, 0, K2 - 1)], 0.0)           # (L1,L2,C1,C2)
    W2_std = jnp.transpose(W2_full, (0, 2, 1, 3)).reshape(L1 * C1, L2 * C2)
    q_order = jnp.concatenate([jnp.arange(LP) * 2, jnp.arange(LP) * 2 + 1])
    col_idx = (q_order[:, None] * C2 + jnp.arange(C2)[None, :]).reshape(-1)
    W2_big = W2_std[:, col_idx]                                        # (L1*C1, 2*LP*C2)
    b2_big = jnp.tile(conv2_b.astype(f32), 2 * LP).reshape(1, 2 * LP * C2)

    # ---- fc1: PyTorch flat index c2*LP+j  ->  pooled layout j*C2+c2 ----
    Wf1 = jnp.transpose(fc1_w.astype(f32).reshape(H, C2, LP),
                        (2, 1, 0)).reshape(LP * C2, H)                 # (LP*C2, H)
    bf1 = fc1_b.astype(f32).reshape(1, H)

    # ---- fc2, zero-padded to a 128-lane output slab ----
    Wf2 = jnp.zeros((H, NCp), f32).at[:, :NC].set(jnp.transpose(fc2_w.astype(f32)))
    bf2 = jnp.zeros((1, NCp), f32).at[:, :NC].set(fc2_b.astype(f32).reshape(1, NC))

    out = pl.pallas_call(
        cnn_kernel,
        out_shape=jax.ShapeDtypeStruct((Bp, NCp), f32),
        grid_spec=pl.GridSpec(
            grid=(Bp // TB,),
            in_specs=[
                pl.BlockSpec((TB, L), lambda b: (b, 0)),                 # x slab
                pl.BlockSpec((L, L1 * C1), lambda b: (0, 0)),            # W1_big
                pl.BlockSpec((1, L1 * C1), lambda b: (0, 0)),            # b1_big
                pl.BlockSpec((L1 * C1, 2 * LP * C2), lambda b: (0, 0)),  # W2_big
                pl.BlockSpec((1, 2 * LP * C2), lambda b: (0, 0)),        # b2_big
                pl.BlockSpec((LP * C2, H), lambda b: (0, 0)),            # Wf1
                pl.BlockSpec((1, H), lambda b: (0, 0)),                  # bf1
                pl.BlockSpec((H, NCp), lambda b: (0, 0)),                # Wf2
                pl.BlockSpec((1, NCp), lambda b: (0, 0)),                # bf2
            ],
            out_specs=pl.BlockSpec((TB, NCp), lambda b: (b, 0)),
        ),
        compiler_params=pltpu.CompilerParams(
            dimension_semantics=("parallel",)),
    )(x2, W1_big, b1_big, W2_big, b2_big, Wf1, bf1, Wf2, bf2)

    return out[:B, :NC]


def ref_forward(x, conv1_w, conv1_b, conv2_w, conv2_b,
                fc1_w, fc1_b, fc2_w, fc2_b):
    """Pure-JAX reference mirroring the PyTorch forward (eval mode)."""
    dn1 = lax.conv_dimension_numbers(x.shape, conv1_w.shape,
                                     ('NCH', 'OIH', 'NCH'))
    h = lax.conv_general_dilated(x, conv1_w, (1,), 'VALID',
                                 dimension_numbers=dn1,
                                 precision=lax.Precision.HIGHEST)
    h = jnp.maximum(h + conv1_b[None, :, None], 0.0)
    dn2 = lax.conv_dimension_numbers(h.shape, conv2_w.shape,
                                     ('NCH', 'OIH', 'NCH'))
    h = lax.conv_general_dilated(h, conv2_w, (1,), 'VALID',
                                 dimension_numbers=dn2,
                                 precision=lax.Precision.HIGHEST)
    h = jnp.maximum(h + conv2_b[None, :, None], 0.0)
    B, C, Lc = h.shape
    Lp = (Lc - 2) // 2 + 1
    h = h[:, :, :Lp * 2].reshape(B, C, Lp, 2).max(axis=-1)
    h = h.reshape(B, -1)
    h = jnp.maximum(jnp.dot(h, fc1_w.T, precision=lax.Precision.HIGHEST)
                    + fc1_b[None, :], 0.0)
    return jnp.dot(h, fc2_w.T, precision=lax.Precision.HIGHEST) + fc2_b[None, :]


if __name__ == "__main__":
    # Small, forward-consistent configuration.
    B = 2
    input_dim = 16                    # L
    conv_out_channels = (4, 8)        # C1, C2
    kernel_sizes = (3, 3)             # K1, K2
    fc_hidden_units = 32              # H
    num_classes = 5                   # NC

    C1, C2 = conv_out_channels
    K1, K2 = kernel_sizes
    L1 = input_dim - K1 + 1
    L2 = L1 - K2 + 1
    LP = (L2 - 2) // 2 + 1
    fc1_in = C2 * LP

    key = jax.random.PRNGKey(0)
    kx, kw1, kw2, kf1, kf2 = jax.random.split(key, 5)

    # Deterministic init mirroring _initialize_weights (kaiming fan_out / xavier).
    conv1_w = (jax.random.normal(kw1, (C1, 1, K1), jnp.float32)
               * jnp.sqrt(2.0 / (C1 * K1)))
    conv1_b = jnp.zeros((C1,), jnp.float32)
    conv2_w = (jax.random.normal(kw2, (C2, C1, K2), jnp.float32)
               * jnp.sqrt(2.0 / (C2 * K2)))
    conv2_b = jnp.zeros((C2,), jnp.float32)
    fc1_w = (jax.random.normal(kf1, (fc_hidden_units, fc1_in), jnp.float32)
             * jnp.sqrt(2.0 / (fc1_in + fc_hidden_units)))
    fc1_b = jnp.zeros((fc_hidden_units,), jnp.float32)
    fc2_w = (jax.random.normal(kf2, (num_classes, fc_hidden_units), jnp.float32)
             * jnp.sqrt(2.0 / (fc_hidden_units + num_classes)))
    fc2_b = jnp.zeros((num_classes,), jnp.float32)

    x = jax.random.normal(kx, (B, 1, input_dim), jnp.float32)

    out = pallas_cnn_forward(x, conv1_w, conv1_b, conv2_w, conv2_b,
                             fc1_w, fc1_b, fc2_w, fc2_b, kernel_sizes)
    out = jax.block_until_ready(out)

    ref = ref_forward(x, conv1_w, conv1_b, conv2_w, conv2_b,
                      fc1_w, fc1_b, fc2_w, fc2_b)
    assert out.shape == (B, num_classes), out.shape
    assert jnp.allclose(out, ref, atol=1e-3, rtol=1e-3), (out, ref)

    print("KERNEL_OK")
</pallas_src>

<mosaic_0001>
module attributes {stable_mosaic.version = 11 : i64} {
  func.func @cnn_kernel(%arg0: i32, %arg1: memref<8x16xf32, #tpu.memory_space<vmem>>, %arg2: memref<16x56xf32, #tpu.memory_space<vmem>>, %arg3: memref<1x56xf32, #tpu.memory_space<vmem>>, %arg4: memref<56x96xf32, #tpu.memory_space<vmem>>, %arg5: memref<1x96xf32, #tpu.memory_space<vmem>>, %arg6: memref<48x32xf32, #tpu.memory_space<vmem>>, %arg7: memref<1x32xf32, #tpu.memory_space<vmem>>, %arg8: memref<32x128xf32, #tpu.memory_space<vmem>>, %arg9: memref<1x128xf32, #tpu.memory_space<vmem>>, %arg10: memref<8x128xf32, #tpu.memory_space<vmem>>) attributes {dimension_semantics = [#tpu.dimension_semantics<parallel>], iteration_bounds = array<i64: 1>, scalar_prefetch = 0 : i64, scratch_operands = 0 : i64, tpu.core_type = #tpu.core_type<tc>, window_params = [{transform_indices = @transform_0, window_bounds = array<i64: 8, 16>}, {pipeline_mode = #tpu.pipeline_mode<synchronous>, transform_indices = @transform_1, window_bounds = array<i64: 16, 56>}, {pipeline_mode = #tpu.pipeline_mode<synchronous>, transform_indices = @transform_2, window_bounds = array<i64: 1, 56>}, {pipeline_mode = #tpu.pipeline_mode<synchronous>, transform_indices = @transform_3, window_bounds = array<i64: 56, 96>}, {pipeline_mode = #tpu.pipeline_mode<synchronous>, transform_indices = @transform_4, window_bounds = array<i64: 1, 96>}, {pipeline_mode = #tpu.pipeline_mode<synchronous>, transform_indices = @transform_5, window_bounds = array<i64: 48, 32>}, {pipeline_mode = #tpu.pipeline_mode<synchronous>, transform_indices = @transform_6, window_bounds = array<i64: 1, 32>}, {pipeline_mode = #tpu.pipeline_mode<synchronous>, transform_indices = @transform_7, window_bounds = array<i64: 32, 128>}, {pipeline_mode = #tpu.pipeline_mode<synchronous>, transform_indices = @transform_8, window_bounds = array<i64: 1, 128>}, {transform_indices = @transform_9, window_bounds = array<i64: 8, 128>}]} {
    %c0 = arith.constant 0 : index
    %c0_0 = arith.constant 0 : index
    %0 = vector.load %arg1[%c0, %c0_0] : memref<8x16xf32, #tpu.memory_space<vmem>>, vector<8x16xf32>
    %c0_1 = arith.constant 0 : index
    %c0_2 = arith.constant 0 : index
    %1 = vector.load %arg2[%c0_1, %c0_2] : memref<16x56xf32, #tpu.memory_space<vmem>>, vector<16x56xf32>
    %cst = arith.constant dense<0.000000e+00> : vector<8x56xf32>
    %2 = tpu.matmul %0, %1, %cst {dimension_numbers = #tpu.dot_dimension_numbers<[1], [0], [0], [1], [0, 0, 1, 1], [], []>} : vector<8x16xf32>, vector<16x56xf32>, vector<8x56xf32> -> vector<8x56xf32>
    %c0_3 = arith.constant 0 : index
    %c0_4 = arith.constant 0 : index
    %3 = vector.load %arg3[%c0_3, %c0_4] : memref<1x56xf32, #tpu.memory_space<vmem>>, vector<1x56xf32>
    %4 = vector.broadcast %3 : vector<1x56xf32> to vector<8x56xf32>
    %5 = arith.addf %2, %4 : vector<8x56xf32>
    %cst_5 = arith.constant 0.000000e+00 : f32
    %6 = vector.broadcast %cst_5 : f32 to vector<8x56xf32>
    %7 = arith.maximumf %5, %6 : vector<8x56xf32>
    %c0_6 = arith.constant 0 : index
    %c0_7 = arith.constant 0 : index
    %8 = vector.load %arg4[%c0_6, %c0_7] : memref<56x96xf32, #tpu.memory_space<vmem>>, vector<56x96xf32>
    %cst_8 = arith.constant dense<0.000000e+00> : vector<8x96xf32>
    %9 = tpu.matmul %7, %8, %cst_8 {dimension_numbers = #tpu.dot_dimension_numbers<[1], [0], [0], [1], [0, 0, 1, 1], [], []>} : vector<8x56xf32>, vector<56x96xf32>, vector<8x96xf32> -> vector<8x96xf32>
    %c0_9 = arith.constant 0 : index
    %c0_10 = arith.constant 0 : index
    %10 = vector.load %arg5[%c0_9, %c0_10] : memref<1x96xf32, #tpu.memory_space<vmem>>, vector<1x96xf32>
    %11 = vector.broadcast %10 : vector<1x96xf32> to vector<8x96xf32>
    %12 = arith.addf %9, %11 : vector<8x96xf32>
    %cst_11 = arith.constant 0.000000e+00 : f32
    %13 = vector.broadcast %cst_11 : f32 to vector<8x96xf32>
    %14 = arith.maximumf %12, %13 : vector<8x96xf32>
    %15 = vector.extract_strided_slice %14 {offsets = [0, 0], sizes = [8, 48], strides = [1, 1]} : vector<8x96xf32> to vector<8x48xf32>
    %16 = vector.extract_strided_slice %14 {offsets = [0, 48], sizes = [8, 48], strides = [1, 1]} : vector<8x96xf32> to vector<8x48xf32>
    %17 = arith.maximumf %15, %16 : vector<8x48xf32>
    %c0_12 = arith.constant 0 : index
    %c0_13 = arith.constant 0 : index
    %18 = vector.load %arg6[%c0_12, %c0_13] : memref<48x32xf32, #tpu.memory_space<vmem>>, vector<48x32xf32>
    %cst_14 = arith.constant dense<0.000000e+00> : vector<8x32xf32>
    %19 = tpu.matmul %17, %18, %cst_14 {dimension_numbers = #tpu.dot_dimension_numbers<[1], [0], [0], [1], [0, 0, 1, 1], [], []>} : vector<8x48xf32>, vector<48x32xf32>, vector<8x32xf32> -> vector<8x32xf32>
    %c0_15 = arith.constant 0 : index
    %c0_16 = arith.constant 0 : index
    %20 = vector.load %arg7[%c0_15, %c0_16] : memref<1x32xf32, #tpu.memory_space<vmem>>, vector<1x32xf32>
    %21 = vector.broadcast %20 : vector<1x32xf32> to vector<8x32xf32>
    %22 = arith.addf %19, %21 : vector<8x32xf32>
    %cst_17 = arith.constant 0.000000e+00 : f32
    %23 = vector.broadcast %cst_17 : f32 to vector<8x32xf32>
    %24 = arith.maximumf %22, %23 : vector<8x32xf32>
    %c0_18 = arith.constant 0 : index
    %c0_19 = arith.constant 0 : index
    %25 = vector.load %arg8[%c0_18, %c0_19] : memref<32x128xf32, #tpu.memory_space<vmem>>, vector<32x128xf32>
    %cst_20 = arith.constant dense<0.000000e+00> : vector<8x128xf32>
    %26 = tpu.matmul %24, %25, %cst_20 {dimension_numbers = #tpu.dot_dimension_numbers<[1], [0], [0], [1], [0, 0, 1, 1], [], []>} : vector<8x32xf32>, vector<32x128xf32>, vector<8x128xf32> -> vector<8x128xf32>
    %c0_21 = arith.constant 0 : index
    %c0_22 = arith.constant 0 : index
    %27 = vector.load %arg9[%c0_21, %c0_22] : memref<1x128xf32, #tpu.memory_space<vmem>>, vector<1x128xf32>
    %28 = vector.broadcast %27 : vector<1x128xf32> to vector<8x128xf32>
    %29 = arith.addf %26, %28 : vector<8x128xf32>
    %c0_23 = arith.constant 0 : index
    %c0_24 = arith.constant 0 : index
    %30 = vector.load %arg10[%c0_23, %c0_24] : memref<8x128xf32, #tpu.memory_space<vmem>>, vector<8x128xf32>
    tpu.vector_store %arg10[%c0_23, %c0_24], %29 {strides = array<i32>} : memref<8x128xf32, #tpu.memory_space<vmem>>, vector<8x128xf32>,
    return
  }
  func.func @transform_0(%arg0: i32) -> (i32, i32) {
    %c0_i32 = arith.constant 0 : i32
    %c0_i32_0 = arith.constant 0 : i32
    return %arg0, %c0_i32 : i32, i32
  }
  func.func @transform_1(%arg0: i32) -> (i32, i32) {
    %c0_i32 = arith.constant 0 : i32
    %c0_i32_0 = arith.constant 0 : i32
    %c0_i32_1 = arith.constant 0 : i32
    return %c0_i32, %c0_i32_0 : i32, i32
  }
  func.func @transform_2(%arg0: i32) -> (i32, i32) {
    %c0_i32 = arith.constant 0 : i32
    %c0_i32_0 = arith.constant 0 : i32
    %c0_i32_1 = arith.constant 0 : i32
    return %c0_i32, %c0_i32_0 : i32, i32
  }
  func.func @transform_3(%arg0: i32) -> (i32, i32) {
    %c0_i32 = arith.constant 0 : i32
    %c0_i32_0 = arith.constant 0 : i32
    %c0_i32_1 = arith.constant 0 : i32
    return %c0_i32, %c0_i32_0 : i32, i32
  }
  func.func @transform_4(%arg0: i32) -> (i32, i32) {
    %c0_i32 = arith.constant 0 : i32
    %c0_i32_0 = arith.constant 0 : i32
    %c0_i32_1 = arith.constant 0 : i32
    return %c0_i32, %c0_i32_0 : i32, i32
  }
  func.func @transform_5(%arg0: i32) -> (i32, i32) {
    %c0_i32 = arith.constant 0 : i32
    %c0_i32_0 = arith.constant 0 : i32
    %c0_i32_1 = arith.constant 0 : i32
    return %c0_i32, %c0_i32_0 : i32, i32
  }
  func.func @transform_6(%arg0: i32) -> (i32, i32) {
    %c0_i32 = arith.constant 0 : i32
    %c0_i32_0 = arith.constant 0 : i32
    %c0_i32_1 = arith.constant 0 : i32
    return %c0_i32, %c0_i32_0 : i32, i32
  }
  func.func @transform_7(%arg0: i32) -> (i32, i32) {
    %c0_i32 = arith.constant 0 : i32
    %c0_i32_0 = arith.constant 0 : i32
    %c0_i32_1 = arith.constant 0 : i32
    return %c0_i32, %c0_i32_0 : i32, i32
  }
  func.func @transform_8(%arg0: i32) -> (i32, i32) {
    %c0_i32 = arith.constant 0 : i32
    %c0_i32_0 = arith.constant 0 : i32
    %c0_i32_1 = arith.constant 0 : i32
    return %c0_i32, %c0_i32_0 : i32, i32
  }
  func.func @transform_9(%arg0: i32) -> (i32, i32) {
    %c0_i32 = arith.constant 0 : i32
    %c0_i32_0 = arith.constant 0 : i32
    return %arg0, %c0_i32 : i32, i32
  }
}

</mosaic_0001>

<bundles_post_ra>
// kernel: tile.13
= control target key start
LH: loop header
LB: loop body
LE: loop exit
PB: predicated region body
PF: predicated region fallthrough
CT: control target
= control target key end

     0   :  { %s28_s0 = inlined_call_operand.vmem [shape: f32[4], index: 0, kind: input, shape index: {}]   ;;  %s29_s1 = inlined_call_operand.vmem [shape: f32[14,4], index: 1, kind: output, shape index: {}]  }
   0x1   :  { %v4_v0 = vld [vmem:[%s28_s0] ss:$0 sm:$0xff] }
   0x2   :  { %5 = vst [vmem:[%s29_s1] sm:$0xff] %v4_v0 }
   0x3   :  { %8 = vst [vmem:[%s29_s1 + $0x8] sm:$0xff] %v4_v0 }

// kernel: tile.14
= control target key start
LH: loop header
LB: loop body
LE: loop exit
PB: predicated region body
PF: predicated region fallthrough
CT: control target
= control target key end

     0   :  { %s115_s10 = smov 52   ;;  %s116_s11 = smov 44   ;;  %vm3_vm0 = vcmask 31744   ;;  %vm9_vm1 = vcmask 458144   ;;  %vm15_vm2 = vcmask 425344   ;;  %vm21_vm3 = vcmask 392544   ;;  %s183_s0 = inlined_call_operand.vmem [shape: f32[14,4], index: 0, kind: input, shape index: {}]   ;;  %s184_s1 = inlined_call_operand.vmem [shape: f32[1,56], index: 1, kind: output, shape index: {}]  }
   0x1   :  { %v89_v0 = vld [vmem:[%s183_s0 + $0xd] sm:$0x1]   ;;  %v91_v1 = vld [vmem:[%s183_s0 + $0xb] sm:$0x1]   ;;  %v93_v2 = vld [vmem:[%s183_s0 + $0x9] sm:$0x1]  }
   0x2   :  { %7 = vrot.lane.b32.xlu0 %v89_v0, %s115_s10  ;;  %19 = vrot.lane.b32.xlu1 %v91_v1, %s116_s11  ;;  %s117_s14 = smov 36   ;;  %v90_v3 = vld [vmem:[%s183_s0 + $0xc] sm:$0x1]   ;;  %v92_v4 = vld [vmem:[%s183_s0 + $0xa] sm:$0x1]   ;;  %s118_s19 = smov 48  }
   0x3   :  { %31 = vrot.lane.b32.xlu2 %v93_v2, %s117_s14  ;;  %s119_s20 = smov 40   ;;  %v94_v5 = vld [vmem:[%s183_s0 + $0x8] sm:$0x1]   ;;  %s120_s23 = smov 32   ;;  %v95_v6 = vld [vmem:[%s183_s0 + $0x7] sm:$0x1]  }
   0x4   :  { %v96_v7 = vld [vmem:[%s183_s0 + $0x6] sm:$0x1]   ;;  %s121_s28 = smov 28   ;;  %s122_s29 = smov 24   ;;  %v97_v8 = vld [vmem:[%s183_s0 + $0x5] sm:$0x1]  }
   0x5   :  { %s123_s3 = smov 20   ;;  %v98_v9 = vld [vmem:[%s183_s0 + $0x4] sm:$0x1]   ;;  %v99_v10 = vld [vmem:[%s183_s0 + $0x3] sm:$0x1]   ;;  %s124_s8 = smov 16  }
   0x6   :  { %s125_s9 = smov 12   ;;  %v100_v11 = vld [vmem:[%s183_s0 + $0x2] sm:$0x1]   ;;  %s126_s12 = smov 8   ;;  %v101_v12 = vld [vmem:[%s183_s0 + $0x1] sm:$0x1]  }
   0x7   :  { %s127_s15 = smov 4   ;;  %v2_v13 = vld [vmem:[%s183_s0] sm:$0x1]   ;;  %vm27_vm4 = vcmask 359744   ;;  %vm33_vm5 = vcmask 326944   ;;  %vm39_vm6 = vcmask 294144  }
   0x8   :  { %4 = vst.msk [vmem:[#allocation0] sm:$0x1] %vm3_vm0, %v2_v13   ;;  %vm45_vm7 = vcmask 261344   ;;  %vm51_vm8 = vcmask 228544   ;;  %vm57_vm9 = vcmask 195744   ;;  %vm63_vm10 = vcmask 162944  }
   0x9   :  { %vm69_vm11 = vcmask 130144   ;;  %vm75_vm12 = vcmask 97344   ;;  %vm81_vm13 = vcmask 64544  }
   0xa   :  { %13 = vrot.lane.b32.xlu0 %v90_v3, %s118_s19  ;;  %25 = vrot.lane.b32.xlu1 %v92_v4, %s119_s20 }
   0xb   :  { %37 = vrot.lane.b32.xlu2 %v94_v5, %s120_s23 }
  0x12   :  { %43 = vrot.lane.b32.xlu0 %v95_v6, %s121_s28  ;;  %49 = vrot.lane.b32.xlu1 %v96_v7, %s122_s29 }
  0x13   :  { %55 = vrot.lane.b32.xlu2 %v97_v8, %s123_s3 }
  0x1a   :  { %61 = vrot.lane.b32.xlu0 %v98_v9, %s124_s8  ;;  %67 = vrot.lane.b32.xlu1 %v99_v10, %s125_s9 }
  0x1b   :  { %73 = vrot.lane.b32.xlu2 %v100_v11, %s126_s12 }
  0x22   :  { %79 = vrot.lane.b32.xlu0 %v101_v12, %s127_s15 }
  0x5d   :  { %v32_v14 = vpop.permute.xlu2 %31  }
  0x65   :  { %v38_v15 = vpop.permute.xlu2 %37  }
  0x6d   :  { %v56_v16 = vpop.permute.xlu2 %55  }
  0x74   :  { %v8_v17 = vpop.permute.xlu0 %7   ;;  %v20_v18 = vpop.permute.xlu1 %19  }
  0x75   :  { %10 = vst.msk [vmem:[#allocation0] sm:$0x1] %vm9_vm1, %v8_v17   ;;  %v74_v19 = vpop.permute.xlu2 %73  }
  0x7c   :  { %v14_v20 = vpop.permute.xlu0 %13   ;;  %v26_v21 = vpop.permute.xlu1 %25  }
  0x7d   :  { %16 = vst.msk [vmem:[#allocation0] sm:$0x1] %vm15_vm2, %v14_v20  }
  0x7e   :  { %22 = vst.msk [vmem:[#allocation0] sm:$0x1] %vm21_vm3, %v20_v18  }
  0x7f   :  { %28 = vst.msk [vmem:[#allocation0] sm:$0x1] %vm27_vm4, %v26_v21  }
  0x80   :  { %34 = vst.msk [vmem:[#allocation0] sm:$0x1] %vm33_vm5, %v32_v14  }
  0x81   :  { %40 = vst.msk [vmem:[#allocation0] sm:$0x1] %vm39_vm6, %v38_v15  }
  0x84   :  { %v44_v22 = vpop.permute.xlu0 %43   ;;  %v50_v23 = vpop.permute.xlu1 %49  }
  0x85   :  { %46 = vst.msk [vmem:[#allocation0] sm:$0x1] %vm45_vm7, %v44_v22  }
  0x86   :  { %52 = vst.msk [vmem:[#allocation0] sm:$0x1] %vm51_vm8, %v50_v23  }
  0x87   :  { %58 = vst.msk [vmem:[#allocation0] sm:$0x1] %vm57_vm9, %v56_v16  }
  0x8c   :  { %v62_v24 = vpop.permute.xlu0 %61   ;;  %v68_v25 = vpop.permute.xlu1 %67  }
  0x8d   :  { %64 = vst.msk [vmem:[#allocation0] sm:$0x1] %vm63_vm10, %v62_v24  }
  0x8e   :  { %70 = vst.msk [vmem:[#allocation0] sm:$0x1] %vm69_vm11, %v68_v25  }
  0x8f   :  { %76 = vst.msk [vmem:[#allocation0] sm:$0x1] %vm75_vm12, %v74_v19  }
  0x94   :  { %v80_v26 = vpop.permute.xlu0 %79  }
  0x95   :  { %82 = vst.msk [vmem:[#allocation0] sm:$0x1] %vm81_vm13, %v80_v26  }
  0x9c   :  { %v85_v27 = vld [vmem:[#allocation0] sm:$0x1] }
  0x9d   :  { %88 = vst [vmem:[%s184_s1] sm:$0x1] %v85_v27 }

// kernel: tile.18
= control target key start
LH: loop header
LB: loop body
LE: loop exit
PB: predicated region body
PF: predicated region fallthrough
CT: control target
= control target key end

     0   :  { %s28_s0 = inlined_call_operand.vmem [shape: f32[8], index: 0, kind: input, shape index: {}]   ;;  %s29_s1 = inlined_call_operand.vmem [shape: f32[12,8], index: 1, kind: output, shape index: {}]  }
   0x1   :  { %v4_v0 = vld [vmem:[%s28_s0] ss:$0 sm:$0xff] }
   0x2   :  { %5 = vst [vmem:[%s29_s1] sm:$0xff] %v4_v0 }
   0x3   :  { %8 = vst [vmem:[%s29_s1 + $0x8] sm:$0xff] %v4_v0 }

// kernel: tile.19
= control target key start
LH: loop header
LB: loop body
LE: loop exit
PB: predicated region body
PF: predicated region fallthrough
CT: control target
= control target key end

     0   :  { %s99_s10 = smov 88   ;;  %s100_s11 = smov 72   ;;  %vm3_vm0 = vcmask 64512   ;;  %vm9_vm1 = vcmask 786112   ;;  %vm15_vm2 = vcmask 720512   ;;  %vm21_vm3 = vcmask 654912   ;;  %s159_s0 = inlined_call_operand.vmem [shape: f32[12,8], index: 0, kind: input, shape index: {}]   ;;  %s160_s1 = inlined_call_operand.vmem [shape: f32[1,96], index: 1, kind: output, shape index: {}]  }
   0x1   :  { %v77_v0 = vld [vmem:[%s159_s0 + $0xb] sm:$0x1]   ;;  %v79_v1 = vld [vmem:[%s159_s0 + $0x9] sm:$0x1]   ;;  %v81_v2 = vld [vmem:[%s159_s0 + $0x7] sm:$0x1]  }
   0x2   :  { %7 = vrot.lane.b32.xlu0 %v77_v0, %s99_s10  ;;  %19 = vrot.lane.b32.xlu1 %v79_v1, %s100_s11  ;;  %s101_s14 = smov 56   ;;  %v78_v3 = vld [vmem:[%s159_s0 + $0xa] sm:$0x1]   ;;  %v80_v4 = vld [vmem:[%s159_s0 + $0x8] sm:$0x1]   ;;  %s102_s19 = smov 80  }
   0x3   :  { %31 = vrot.lane.b32.xlu2 %v81_v2, %s101_s14  ;;  %s103_s20 = smov 64   ;;  %v82_v5 = vld [vmem:[%s159_s0 + $0x6] sm:$0x1]   ;;  %s104_s23 = smov 48   ;;  %v83_v6 = vld [vmem:[%s159_s0 + $0x5] sm:$0x1]  }
   0x4   :  { %v84_v7 = vld [vmem:[%s159_s0 + $0x4] sm:$0x1]   ;;  %s105_s28 = smov 40   ;;  %s106_s29 = smov 32   ;;  %v85_v8 = vld [vmem:[%s159_s0 + $0x3] sm:$0x1]  }
   0x5   :  { %s107_s3 = smov 24   ;;  %v86_v9 = vld [vmem:[%s159_s0 + $0x2] sm:$0x1]   ;;  %v87_v10 = vld [vmem:[%s159_s0 + $0x1] sm:$0x1]   ;;  %s108_s8 = smov 16  }
   0x6   :  { %s109_s9 = smov 8   ;;  %v2_v11 = vld [vmem:[%s159_s0] sm:$0x1]   ;;  %vm27_vm4 = vcmask 589312   ;;  %vm33_vm5 = vcmask 523712   ;;  %vm39_vm6 = vcmask 458112  }
   0x7   :  { %4 = vst.msk [vmem:[#allocation0] sm:$0x1] %vm3_vm0, %v2_v11   ;;  %vm45_vm7 = vcmask 392512   ;;  %vm51_vm8 = vcmask 326912   ;;  %vm57_vm9 = vcmask 261312   ;;  %vm63_vm10 = vcmask 195712  }
   0x8   :  { %vm69_vm11 = vcmask 130112  }
   0xa   :  { %13 = vrot.lane.b32.xlu0 %v78_v3, %s102_s19  ;;  %25 = vrot.lane.b32.xlu1 %v80_v4, %s103_s20 }
   0xb   :  { %37 = vrot.lane.b32.xlu2 %v82_v5, %s104_s23 }
  0x12   :  { %43 = vrot.lane.b32.xlu0 %v83_v6, %s105_s28  ;;  %49 = vrot.lane.b32.xlu1 %v84_v7, %s106_s29 }
  0x13   :  { %55 = vrot.lane.b32.xlu2 %v85_v8, %s107_s3 }
  0x1a   :  { %61 = vrot.lane.b32.xlu0 %v86_v9, %s108_s8  ;;  %67 = vrot.lane.b32.xlu1 %v87_v10, %s109_s9 }
  0x5d   :  { %v32_v12 = vpop.permute.xlu2 %31  }
  0x65   :  { %v38_v13 = vpop.permute.xlu2 %37  }
  0x6d   :  { %v56_v14 = vpop.permute.xlu2 %55  }
  0x74   :  { %v8_v15 = vpop.permute.xlu0 %7   ;;  %v20_v16 = vpop.permute.xlu1 %19  }
  0x75   :  { %10 = vst.msk [vmem:[#allocation0] sm:$0x1] %vm9_vm1, %v8_v15  }
  0x7c   :  { %v14_v17 = vpop.permute.xlu0 %13   ;;  %v26_v18 = vpop.permute.xlu1 %25  }
  0x7d   :  { %16 = vst.msk [vmem:[#allocation0] sm:$0x1] %vm15_vm2, %v14_v17  }
  0x7e   :  { %22 = vst.msk [vmem:[#allocation0] sm:$0x1] %vm21_vm3, %v20_v16  }
  0x7f   :  { %28 = vst.msk [vmem:[#allocation0] sm:$0x1] %vm27_vm4, %v26_v18  }
  0x80   :  { %34 = vst.msk [vmem:[#allocation0] sm:$0x1] %vm33_vm5, %v32_v12  }
  0x81   :  { %40 = vst.msk [vmem:[#allocation0] sm:$0x1] %vm39_vm6, %v38_v13  }
  0x84   :  { %v44_v19 = vpop.permute.xlu0 %43   ;;  %v50_v20 = vpop.permute.xlu1 %49  }
  0x85   :  { %46 = vst.msk [vmem:[#allocation0] sm:$0x1] %vm45_vm7, %v44_v19  }
  0x86   :  { %52 = vst.msk [vmem:[#allocation0] sm:$0x1] %vm51_vm8, %v50_v20  }
  0x87   :  { %58 = vst.msk [vmem:[#allocation0] sm:$0x1] %vm57_vm9, %v56_v14  }
  0x8c   :  { %v62_v21 = vpop.permute.xlu0 %61   ;;  %v68_v22 = vpop.permute.xlu1 %67  }
  0x8d   :  { %64 = vst.msk [vmem:[#allocation0] sm:$0x1] %vm63_vm10, %v62_v21  }
  0x8e   :  { %70 = vst.msk [vmem:[#allocation0] sm:$0x1] %vm69_vm11, %v68_v22  }
  0x95   :  { %v73_v23 = vld [vmem:[#allocation0] sm:$0x1] }
  0x96   :  { %76 = vst [vmem:[%s160_s1] sm:$0x1] %v73_v23 }

// kernel: pallas_cnn_forward.1
= control target key start
LH: loop header
LB: loop body
LE: loop exit
PB: predicated region body
PF: predicated region fallthrough
CT: control target
= control target key end

     0   :  { %vm39_vm0 = vcmask 130048   ;;  %vm75_vm1 = vcmask 457728   ;;  %s186_s16 = smov 80   ;;  %vm115_vm2 = vcmask 392192   ;;  %vm148_vm3 = vcmask 261120   ;;  %s312_s1 = inlined_call_operand.vmem [shape: f32[16,56], index: 1, kind: input, shape index: {}]   ;;  %s313_s0 = inlined_call_operand.vmem [shape: f32[8,16], index: 0, kind: input, shape index: {}]   ;;  %s314_s3 = inlined_call_operand.vmem [shape: f32[56,96], index: 3, kind: input, shape index: {}]   ;;  %s315_s2 = inlined_call_operand.vmem [shape: f32[1,56], index: 2, kind: input, shape index: {}]   ;;  %s316_s4 = inlined_call_operand.vmem [shape: f32[1,96], index: 4, kind: input, shape index: {}]   ;;  %s317_s5 = inlined_call_operand.vmem [shape: f32[48,32], index: 5, kind: input, shape index: {}]   ;;  %s318_s6 = inlined_call_operand.vmem [shape: f32[1,32], index: 6, kind: input, shape index: {}]   ;;  %s319_s7 = inlined_call_operand.vmem [shape: f32[32,128], index: 7, kind: input, shape index: {}]   ;;  %s320_s8 = inlined_call_operand.vmem [shape: f32[1,128], index: 8, kind: input, shape index: {}]   ;;  %s321_s9 = inlined_call_operand.vmem [shape: f32[8,128], index: 9, kind: output, shape index: {}]  }
   0x1   :  { %v34_v0 = vld [vmem:[%s312_s1 + $0x8] sm:$0xff]  ;;  %v33_v1 = vld [vmem:[%s312_s1] sm:$0xff]  ;;  %v70_v3 = vld [vmem:[%s314_s3 + $0x30] sm:$0xff] }
   0x2   :  { %57 = vmatpush.msra.mxu0 %v34_v0  ;;  %v32_v2 = vld [vmem:[%s313_s0] sm:$0xff]  ;;  %v69_v4 = vld [vmem:[%s314_s3 + $0x28] sm:$0xff]  ;;  %88 = vmatpush.msra.mxu1 %v70_v3  ;;  %v67_v6 = vld [vmem:[%s314_s3 + $0x18] sm:$0xff] }
   0x3   :  { %v68_v5 = vld [vmem:[%s314_s3 + $0x20] sm:$0xff]  ;;  %v66_v7 = vld [vmem:[%s314_s3 + $0x10] sm:$0xff]  ;;  %v65_v8 = vld [vmem:[%s314_s3 + $0x8] sm:$0xff] }
   0x4   :  { %58 = vmatpush.msra.mxu0 %v33_v1  ;;  %89 = vmatpush.msra.mxu1 %v69_v4  ;;  %v64_v9 = vld [vmem:[%s314_s3] sm:$0xff]  ;;  %v110_v14 = vld [vmem:[%s317_s5 + $0x28] sm:$0xff]  ;;  %v108_v16 = vld [vmem:[%s317_s5 + $0x18] sm:$0xff] }
   0x5   :  { %177 = vmatmul.msk.f32.vlgmr.msra.gmra.mxu0 %vm39_vm0, %v32_v2  ;;  %v182_v10 = vld [vmem:[%s315_s2] ss:$0 sm:$0xff]  ;;  %129 = vmatpush.msra.mxu2 %v110_v14  ;;  %v107_v17 = vld [vmem:[%s317_s5 + $0x10] sm:$0xff]  ;;  %v106_v22 = vld [vmem:[%s317_s5 + $0x8] sm:$0xff] }
   0x6   :  { %90 = vmatpush.msra.mxu1 %v68_v5  ;;  %v109_v15 = vld [vmem:[%s317_s5 + $0x20] sm:$0xff]  ;;  %v143_v24 = vld [vmem:[%s319_s7 + $0x18] sm:$0xff]  ;;  %v142_v27 = vld [vmem:[%s319_s7 + $0x10] sm:$0xff] }
   0x7   :  { %130 = vmatpush.msra.mxu2 %v109_v15  ;;  %v183_v18 = vld [vmem:[%s316_s4] ss:$0 sm:$0xff]  ;;  %164 = vmatpush.msra.mxu3 %v143_v24  ;;  %v141_v28 = vld [vmem:[%s319_s7 + $0x8] sm:$0xff] }
   0x8   :  { %91 = vmatpush.msra.mxu1 %v67_v6  ;;  %v105_v23 = vld [vmem:[%s317_s5] sm:$0xff] }
   0x9   :  { %131 = vmatpush.msra.mxu2 %v108_v16  ;;  %165 = vmatpush.msra.mxu3 %v142_v27  ;;  %v140_v29 = vld [vmem:[%s319_s7] sm:$0xff] }
   0xa   :  { %92 = vmatpush.msra.mxu1 %v66_v7  ;;  %v184_v30 = vld [vmem:[%s318_s6] ss:$0 sm:$0xff] }
   0xb   :  { %132 = vmatpush.msra.mxu2 %v107_v17  ;;  %166 = vmatpush.msra.mxu3 %v141_v28  ;;  %v185_v34 = vld [vmem:[%s320_s8] ss:$0 sm:$0xff] }
   0xc   :  { %93 = vmatpush.msra.mxu1 %v65_v8 }
   0xd   :  { %133 = vmatpush.msra.mxu2 %v106_v22  ;;  %167 = vmatpush.msra.mxu3 %v140_v29 }
   0xe   :  { %94 = vmatpush.msra.mxu1 %v64_v9 }
   0xf   :  { %134 = vmatpush.msra.mxu2 %v105_v23 }
  0x82   :  { %v60_v11 = vpop.f32.mrf.mxu0 }
  0x83   :  { %v61_v12 = vadd.f32 %v182_v10, %v60_v11 }
  0x85   :  { %v63_v13 = vmax.f32 %v61_v12, 0.0 }
  0x87   :  { %178 = vmatmul.msk.f32.vlgmr.msra.gmra.mxu1 %vm75_vm1, %v63_v13 }
 0x104   :  { %v96_v19 = vpop.f32.mrf.mxu1 }
 0x105   :  { %v97_v20 = vadd.f32 %v183_v18, %v96_v19 }
 0x107   :  { %v99_v21 = vmax.f32 %v97_v20, 0.0 }
 0x109   :  { %101 = vrot.lane.b32.xlu0 %v99_v21, %s186_s16 }
 0x17b   :  { %v102_v25 = vpop.permute.xlu0 %101 }
 0x17c   :  { %v104_v26 = vmax.f32 %v99_v21, %v102_v25 }
 0x17e   :  { %179 = vmatmul.msk.f32.vlgmr.msra.gmra.mxu2 %vm115_vm2, %v104_v26 }
 0x201   :  { %v136_v31 = vpop.f32.mrf.mxu2 }
 0x202   :  { %v137_v32 = vadd.f32 %v184_v30, %v136_v31 }
 0x204   :  { %v139_v33 = vmax.f32 %v137_v32, 0.0 }
 0x206   :  { %180 = vmatmul.msk.f32.vlgmr.msra.gmra.mxu3 %vm148_vm3, %v139_v33 }
 0x289   :  { %v169_v35 = vpop.f32.mrf.mxu3 }
 0x28a   :  { %v170_v36 = vadd.f32 %v185_v34, %v169_v35 }
 0x28c   :  { %172 = vst [vmem:[%s321_s9] sm:$0xff] %v170_v36 }

</bundles_post_ra>
